<compile_context>
chip_gen: v7x
topology: tpu7x:2x2x1
jax: 0.10.0
libtpu: 0.0.40
codegen_flags: <defaults>
</compile_context>

<pallas_src>
import math
from functools import partial

import jax
import jax.numpy as jnp
from jax.experimental import pallas as pl
from jax.experimental.pallas import tpu as pltpu


# ----------------------------------------------------------------------------
# Kernels
# ----------------------------------------------------------------------------
def _pe_add_tiled_kernel(x_ref, pe_ref, o_ref):
    # x_ref/o_ref: (tR, Lp) tile of one batch element (batch squeezed).
    # pe_ref     : matching (tR, Lp) f32 tile of the PE table.
    o_ref[...] = (x_ref[...].astype(jnp.float32) + pe_ref[...]).astype(o_ref.dtype)


def _pe_add_resident_kernel(tR, x_ref, pe_ref, o_ref):
    # pe_ref holds the FULL (row-padded) PE slab in VMEM, resident across the grid.
    start = pl.multiple_of(pl.program_id(0) * tR, 8)
    pe_tile = pe_ref[pl.ds(start, tR), :]
    o_ref[...] = (x_ref[...].astype(jnp.float32) + pe_tile).astype(o_ref.dtype)


# ----------------------------------------------------------------------------
# PE table (matches torch: pe[:, 0::2] = sin, pe[:, 1::2] = cos; even E)
# ----------------------------------------------------------------------------
def make_positional_encoding(window_size: int, embedding_size: int) -> jnp.ndarray:
    position = jnp.arange(window_size, dtype=jnp.float32)[:, None]
    div_term = jnp.exp(
        jnp.arange(0, embedding_size, 2, dtype=jnp.float32)
        * -(math.log(10000.0) / embedding_size)
    )
    angles = position * div_term                       # (W, E//2)
    pe = jnp.stack([jnp.sin(angles), jnp.cos(angles)], axis=-1).reshape(
        window_size, embedding_size
    )
    return pe                                          # f32, (W, E)


# ----------------------------------------------------------------------------
# Layout / tiling helpers
# ----------------------------------------------------------------------------
def _packed_sublanes(itemsize: int) -> int:
    return max(8, 32 // itemsize)       # 8 f32, 16 bf16, 32 int8/fp8


def _vmem_capacity_bytes() -> int:
    try:
        info = pltpu.get_tpu_info()
        cap = getattr(info, "vmem_capacity_bytes", None)
        if cap:
            return int(cap)
    except Exception:
        pass
    return 64 * 1024 * 1024             # conservative: v7x per-TC VMEM


def _choose_layout(S: int, E: int, sub_mult: int):
    """Per-batch slab (Rp, Lp) with Rp * Lp == S * E.

    Only dim-merging folds (k whole rows of E per slab row) are considered, so
    the wrapper reshape is a flatten of contiguous dims (bitcast, no relayout).
    """
    if E % 128 == 0:
        return S, E
    k0 = 128 // math.gcd(E, 128)        # smallest k with (k*E) % 128 == 0
    best = None                         # (Lp, Rp)
    k = k0
    while k <= S:
        if S % k == 0:
            Rp, Lp = S // k, k * E
            if Rp < sub_mult or Lp > 4096:
                break                   # larger k only gets worse
            if best is None or (Lp <= 2048 and Lp > best[0]):
                best = (Lp, Rp)
        k += k0
    if best is None:
        return S, E                     # masked lane stores; still correct
    return best[1], best[0]


def _choose_row_tile(Rp: int, Lp: int, itemsize: int, sub_mult: int,
                     budget_bytes: int) -> int:
    max_rows = max(sub_mult, budget_bytes // max(1, Lp * itemsize))
    if Rp <= max_rows:
        return Rp                       # full extent — always a legal block dim
    tR = max(sub_mult, (max_rows // sub_mult) * sub_mult)
    # Prefer a tile that divides Rp (no masked remainder tile), without giving
    # up more than half the byte budget.
    if Rp % sub_mult == 0:
        cand = tR
        while cand >= max(sub_mult, tR // 2):
            if Rp % cand == 0:
                return cand
            cand -= sub_mult
    return tR


def _maybe_split_for_megacore(tR, Rp, grid_r, B, sub_mult, small_vmem):
    """On 2-TC chips make sure there are >= 2 (ideally even) grid work items."""
    work = grid_r * B
    need_split = (work < 2) or (small_vmem and grid_r == 1 and B % 2 == 1)
    if need_split and grid_r == 1 and Rp >= 2 * sub_mult:
        half = ((Rp + 1) // 2 + sub_mult - 1) // sub_mult * sub_mult
        tR = max(sub_mult, min(half, Rp - sub_mult))
        grid_r = pl.cdiv(Rp, tR)
    return tR, grid_r


# ----------------------------------------------------------------------------
# Wrapper
# ----------------------------------------------------------------------------
def positional_encoding_layer(x: jnp.ndarray, pe: jnp.ndarray,
                              *, block_budget_bytes: int | None = None) -> jnp.ndarray:
    """x: (B, S, E); pe: (W, E) f32 table with W >= S. Returns x + pe[:S]."""
    B, S, E = x.shape
    W, Ep = pe.shape
    assert Ep == E and W >= S, "PE table does not cover the input sequence"

    itemsize = jnp.dtype(x.dtype).itemsize
    sub_mult = _packed_sublanes(itemsize)

    vmem_cap = _vmem_capacity_bytes()
    small_vmem = vmem_cap <= 80 * 1024 * 1024           # v7x-like (64 MiB / TC)
    if block_budget_bytes is None:
        block_budget_bytes = (4 if small_vmem else 8) * 1024 * 1024

    Rp, Lp = _choose_layout(S, E, sub_mult)
    assert Rp * Lp == S * E, "lane-fold must preserve the element count"

    tR = _choose_row_tile(Rp, Lp, itemsize, sub_mult, block_budget_bytes)
    grid_r = pl.cdiv(Rp, tR)
    tR, grid_r = _maybe_split_for_megacore(tR, Rp, grid_r, B, sub_mult, small_vmem)

    folded = (Rp, Lp) != (S, E)
    x2 = x.reshape(B, Rp, Lp) if folded else x           # contiguous dim-merge only
    pe2 = pe[:S, :]                                      # f32; cast happens in-kernel
    if folded:
        pe2 = pe2.reshape(Rp, Lp)

    x_spec = pl.BlockSpec((None, tR, Lp), lambda r, b: (b, r, 0))
    out_spec = pl.BlockSpec((None, tR, Lp), lambda r, b: (b, r, 0))
    block_bytes = tR * Lp * itemsize

    pe_f32_bytes = Rp * Lp * 4
    resident_pe = pe_f32_bytes <= 2 * 1024 * 1024
    if resident_pe:
        # Whole table DMA'd once and kept resident; kernel slices it by row tile.
        Rp_pad = grid_r * tR
        if Rp_pad > Rp:
            pe2 = jnp.pad(pe2, ((0, Rp_pad - Rp), (0, 0)))
        pe_spec = pl.BlockSpec((Rp_pad, Lp), lambda r, b: (0, 0))
        kernel = partial(_pe_add_resident_kernel, tR)
        vmem_est = 4 * block_bytes + 2 * Rp_pad * Lp * 4
    else:
        # Batch axis is innermost in the grid, so each PE tile is fetched once.
        pe_spec = pl.BlockSpec((tR, Lp), lambda r, b: (r, 0))
        kernel = _pe_add_tiled_kernel
        vmem_est = 4 * block_bytes + 2 * tR * Lp * 4

    cap_limit = (44 if small_vmem else 80) * 1024 * 1024
    vmem_limit = int(min(cap_limit, max(16 * 1024 * 1024, vmem_est + (4 << 20))))

    cost = pl.CostEstimate(
        flops=B * Rp * Lp,
        transcendentals=0,
        bytes_accessed=2 * B * Rp * Lp * itemsize + Rp * Lp * 4,
    )

    out2 = pl.pallas_call(
        kernel,
        out_shape=jax.ShapeDtypeStruct((B, Rp, Lp), x.dtype),
        grid_spec=pltpu.PrefetchScalarGridSpec(
            num_scalar_prefetch=0,
            grid=(grid_r, B),                      # row tiles outer, batch inner
            in_specs=[x_spec, pe_spec],
            out_specs=out_spec,
        ),
        compiler_params=pltpu.CompilerParams(
            dimension_semantics=("parallel", "parallel"),
            vmem_limit_bytes=vmem_limit,
        ),
        cost_estimate=cost,
    )(x2, pe2)

    return out2.reshape(B, S, E) if folded else out2


# ----------------------------------------------------------------------------
# Self-test
# ----------------------------------------------------------------------------
if __name__ == "__main__":
    root = jax.random.PRNGKey(0)
    k1, k2, k3 = jax.random.split(root, 3)

    # Case 1: module-consistent small shapes (no fold possible -> (S, E) layout).
    B, W, S, E = 2, 16, 8, 32
    x = jax.random.normal(k1, (B, S, E), dtype=jnp.float32)
    pe = make_positional_encoding(W, E)
    out = jax.block_until_ready(positional_encoding_layer(x, pe))
    ref = x + pe[None, :S, :]
    assert out.shape == x.shape and out.dtype == x.dtype
    assert jnp.allclose(out, ref, atol=1e-6), "case 1 mismatch"

    # Case 2: lane-dense E, forced multi-tile grid with a masked remainder tile
    # and a row-padded resident PE (tiny block budget just for the test).
    B2, S2, E2 = 2, 200, 128
    x2 = jax.random.normal(k2, (B2, S2, E2), dtype=jnp.float32)
    pe2 = make_positional_encoding(S2, E2)
    out2 = jax.block_until_ready(
        positional_encoding_layer(x2, pe2, block_budget_bytes=64 * 1024))
    ref2 = x2 + pe2[None, :S2, :]
    assert jnp.allclose(out2, ref2, atol=1e-6), "case 2 mismatch"

    # Case 3: bf16 input exercising the dim-merging lane-fold path (E=64 -> Lp=128).
    B3, S3, E3 = 2, 32, 64
    x3 = jax.random.normal(k3, (B3, S3, E3), dtype=jnp.float32).astype(jnp.bfloat16)
    pe3 = make_positional_encoding(S3, E3)
    out3 = jax.block_until_ready(positional_encoding_layer(x3, pe3))
    ref3 = (x3.astype(jnp.float32) + pe3[None, :S3, :]).astype(jnp.bfloat16)
    assert out3.dtype == jnp.bfloat16
    assert jnp.allclose(out3.astype(jnp.float32), ref3.astype(jnp.float32),
                        atol=1e-2), "case 3 mismatch"

    print("KERNEL_OK")
</pallas_src>

<mosaic_0001>
module attributes {stable_mosaic.version = 11 : i64} {
  func.func @_pe_add_resident_kernel(%arg0: i32, %arg1: i32, %arg2: memref<1x8x32xf32, #tpu.memory_space<vmem>>, %arg3: memref<8x32xf32, #tpu.memory_space<vmem>>, %arg4: memref<1x8x32xf32, #tpu.memory_space<vmem>>) attributes {dimension_semantics = [#tpu.dimension_semantics<parallel>, #tpu.dimension_semantics<parallel>], iteration_bounds = array<i64: 1, 2>, scalar_prefetch = 0 : i64, scratch_operands = 0 : i64, tpu.core_type = #tpu.core_type<tc>, window_params = [{transform_indices = @transform_0, window_bounds = array<i64: 1, 8, 32>}, {pipeline_mode = #tpu.pipeline_mode<synchronous>, transform_indices = @transform_1, window_bounds = array<i64: 8, 32>}, {transform_indices = @transform_2, window_bounds = array<i64: 1, 8, 32>}]} {
    %c8_i32 = arith.constant 8 : i32
    %0 = arith.muli %arg0, %c8_i32 : i32
    %1 = tpu.assume_multiple %0, 8 : i32
    %2 = arith.index_cast %1 : i32 to index
    %c0 = arith.constant 0 : index
    %3 = vector.load %arg3[%2, %c0] : memref<8x32xf32, #tpu.memory_space<vmem>>, vector<8x32xf32>
    %c0_0 = arith.constant 0 : index
    %c0_1 = arith.constant 0 : index
    %c0_2 = arith.constant 0 : index
    %4 = vector.load %arg2[%c0_0, %c0_1, %c0_2] : memref<1x8x32xf32, #tpu.memory_space<vmem>>, vector<1x8x32xf32>
    %5 = vector.shape_cast %4 : vector<1x8x32xf32> to vector<8x32xf32>
    %6 = arith.addf %5, %3 : vector<8x32xf32>
    %c0_3 = arith.constant 0 : index
    %c0_4 = arith.constant 0 : index
    %c0_5 = arith.constant 0 : index
    %7 = vector.load %arg4[%c0_3, %c0_4, %c0_5] : memref<1x8x32xf32, #tpu.memory_space<vmem>>, vector<1x8x32xf32>
    %8 = vector.shape_cast %7 : vector<1x8x32xf32> to vector<8x32xf32>
    %9 = vector.shape_cast %6 : vector<8x32xf32> to vector<1x8x32xf32>
    tpu.vector_store %arg4[%c0_3, %c0_4, %c0_5], %9 {strides = array<i32>} : memref<1x8x32xf32, #tpu.memory_space<vmem>>, vector<1x8x32xf32>,
    return
  }
  func.func @transform_0(%arg0: i32, %arg1: i32) -> (i32, i32, i32) {
    %c0_i32 = arith.constant 0 : i32
    %c0_i32_0 = arith.constant 0 : i32
    return %arg1, %arg0, %c0_i32 : i32, i32, i32
  }
  func.func @transform_1(%arg0: i32, %arg1: i32) -> (i32, i32) {
    %c0_i32 = arith.constant 0 : i32
    %c0_i32_0 = arith.constant 0 : i32
    %c0_i32_1 = arith.constant 0 : i32
    return %c0_i32, %c0_i32_0 : i32, i32
  }
  func.func @transform_2(%arg0: i32, %arg1: i32) -> (i32, i32, i32) {
    %c0_i32 = arith.constant 0 : i32
    %c0_i32_0 = arith.constant 0 : i32
    return %arg1, %arg0, %c0_i32 : i32, i32, i32
  }
}

</mosaic_0001>

<bundles_post_ra>
// kernel: tpu_custom_call.1
= control target key start
LH: loop header
LB: loop body
LE: loop exit
PB: predicated region body
PF: predicated region fallthrough
CT: control target
= control target key end

     0   :  { %7 = vsyncpa [#allocation3], 0  ;;  %s771_s0 = inlined_call_operand.hbm [shape: f32[2,8,32], index: 0, kind: input, shape index: {}]   ;;  %s772_s1 = inlined_call_operand.hbm [shape: f32[8,32], index: 1, kind: input, shape index: {}]   ;;  %s773_s2 = inlined_call_operand.hbm [shape: f32[2,8,32], index: 2, kind: output, shape index: {}]  }
   0x1   :  { %9 = vsyncpa [#allocation3 + $0x1], 0 }
   0x2   :  { %10 = vsyncpa [#allocation6], 0 }
   0x3   :  { %11 = vsyncpa [#allocation4], 0 }
   0x4   :  { %13 = vsyncpa [#allocation4 + $0x1], 0  ;;  %s555_s9 = smov 0   ;;  %s557_s10 = smov 0  }
   0x5   :  { %s559_s11 = smov 0   ;;  %s561_s12 = smov 0  }
   0x6   :  { %s563_s13 = smov 0   ;;  %s565_s14 = smov 0  }
   0x7 LB: > { %s303_s15 = sadd.s32 4294967295, %s535_s14   ;;  %s304_s16 = sadd.s32 4294967294, %s535_s14   ;;  %s535_s14 = sphi %s565_s14, %s19_s14   ;;  %s531_s13 = sphi %s563_s13, %s798_s13   ;;  %s527_s12 = sphi %s561_s12, %s797_s12   ;;  %s523_s11 = sphi %s559_s11, %s796_s11   ;;  %s519_s10 = sphi %s557_s10, %s795_s10   ;;  %s515_s9 = sphi %s555_s9, %s794_s9  }
   0x8   : > { %p53_p0 = scmp.ne.s32.totalorder %s519_s10, %s515_s9  ;;  %p589_p1 = scmp.eq.s32.totalorder %s303_s15, 0 }
   0x9   : > { %p593_p2 = scmp.eq.s32.totalorder %s303_s15, 1  ;;  %p106_p3 = scmp.eq.s32.totalorder %s304_s16, 1 }
   0xa   : > { %s778_s17 = scalar_select %p589_p1, 1, 0 }
   0xb   : > { %s779_s18 = scalar_select %p593_p2, 1, 0 }
   0xc   : > { %p599_p4 = por %p589_p1, %p53_p0  ;;  %p305_p5 = scmp.ge.s32.totalorder %s535_s14, 1 }
   0xd   : > { %p604_p6 = por %p106_p3, %p53_p0  ;;  %p113_p7 = scmp.lt.s32.totalorder %s535_s14, 3 }
   0xe   : > { %s780_s19 = scalar_select %p599_p4, 1, 0 }
   0xf   : > { %s781_s20 = scalar_select %p604_p6, 1, 0 }
  0x10   : > { %p609_p8 = pnand %p305_p5, %p113_p7  ;;  %s537_s22 = smov [#allocation5]  }
  0x11   : > { %s126_s23 = sshll.u32 %s537_s22, 4  ;;  %s28_s25 = sadd.s32 1, %s531_s13  ;;  %s127_s23 = int_to_ptr.vmem [resolvable:$true] %s126_s23 }
  0x12   : > { %s782_s21 = scalar_select %p609_p8, 1, 0 }
  0x13   : > { %p326_p10 = pneg %p609_p8  ;;  %s40_s26 = sadd.s32 1, %s523_s11 }
  0x14   : > { %p624_p12 = scmp.ge.s32.totalorder %s28_s25, 2  ;;  %s391_s30 = scalar_lea.hbm %s772_s1, 128 }
  0x15   : > { %p618_p11 = pnand %p326_p10, %p589_p1  ;;  %p392_p13 = scmp.ne.s32.totalorder %s772_s1, %s391_s30 }
  0x16   : > { %s784_s27 = scalar_select %p624_p12, 1, 0 }
  0x17   : > { %p393_p0 = pneg %p618_p11  ;;  %p398_p7 = scmp.lt.u32.totalorder %s391_s30, %s772_s1 }
  0x19   : > { %p394_p3 = pnand %p393_p0, %p392_p13 }
  0x1b   : > { %p395_p5 = pneg %p394_p3 }
  0x1d   : > { %p400_p10 = pnand %p398_p7, %p395_p5 }
  0x1f   : > { %403 = shalt.err (!%p400_p10)
}
  0x20   : > { %s404_s7 = scalar_lea.vmem %s127_s23, 128  ;;  %p412_p4 = scmp.lt.s32.totalorder %s127_s23, %s127_s23 }
  0x21   : > { %p405_p9 = scmp.ne.s32.totalorder %s127_s23, %s404_s7  ;;  %p413_p8 = scmp.lt.s32.totalorder %s404_s7, %s404_s7 }
  0x23   : > { %p407_p6 = pnand %p405_p9, %p393_p0  ;;  %p414_p2 = por %p413_p8, %p412_p4 }
  0x25   : > { %p408_p1 = pneg %p407_p6 }
  0x27   : > { %p415_p12 = pnand %p414_p2, %p408_p1 }
  0x29   : > { %418 = shalt.err (!%p415_p12)
}
  0x2a   : > { %329 = dma.hbm_to_vmem [thread:$0]  (!%p618_p11), %s772_s1, 128, %s127_s23, [#allocation6]  }
  0x2b   : > { %p785_p4 = scmp.ne.s32.totalorder %s784_s27, 0  ;;  %p47_p1 = scmp.ne.s32.totalorder %s523_s11, %s519_s10 }
  0x2c   : > { %p48_p2 = scmp.eq.s32.totalorder %s535_s14, 0  ;;  %p339_p6 = scmp.lt.s32.totalorder %s535_s14, 2 }
  0x2d   : > { %s800_s25 = smov (%p785_p4, %s28_s25), 0  ;;  %p786_p12 = scmp.ne.s32.totalorder %s779_s18, 0 }
  0x2e   : > { %s35_s16 = ssub.s32 %s531_s13, %s800_s25  ;;  %p49_p9 = por %p48_p2, %p47_p1 }
  0x2f   : > { %p38_p8 = scmp.eq.s32.totalorder %s35_s16, 0  ;;  %p656_p13 = por %p786_p12, %p47_p1 }
  0x30   : > { %s137_s24 = sand.u32 1, %s523_s11   ;;  %s309_s27 = sshll.u32 %s531_s13, 7 }
  0x31   : > { %s664_s28 = scalar_select %p38_p8, %s523_s11, %s40_s26  }
  0x32   : > { %s308_s23 = sshll.u32 %s137_s24, 3  ;;  %s670_s3 = scalar_lea.hbm %s771_s0, %s309_s27 }
  0x33   : > { %s141_s18 = scalar_lea.vmem [#allocation2], %s308_s23  ;;  %p674_p11 = pnand %p339_p6, %p49_p9 }
  0x34   : > { %s149_s4 = sshll.u32 %s141_s18, 4  ;;  %s138_s26 = scalar_lea.sflag [#allocation3], %s137_s24  ;;  %s672_s4 = int_to_ptr.vmem [resolvable:$true] %s149_s4 }
  0x35   : > { %s419_s6 = scalar_lea.hbm %s670_s3, 128  ;;  %p421_p3 = pneg %p674_p11 }
  0x36   : > { %p420_p0 = scmp.ne.s32.totalorder %s670_s3, %s419_s6  ;;  %s424_s15 = scalar_lea.hbm %s771_s0, 256 }
  0x37   : > { %p425_p10 = scmp.lt.u32.totalorder %s670_s3, %s771_s0  ;;  %p426_p4 = scmp.lt.u32.totalorder %s424_s15, %s419_s6 }
  0x38   : > { %p422_p5 = pnand %p421_p3, %p420_p0  ;;  %p428_p2 = scmp.lt.u32.totalorder %s419_s6, %s670_s3 }
  0x39   : > { %p427_p1 = por %p426_p4, %p425_p10 }
  0x3a   : > { %p423_p7 = pneg %p422_p5 }
  0x3b   : > { %p429_p6 = por %p428_p2, %p427_p1 }
  0x3d   : > { %p430_p8 = pnand %p429_p6, %p423_p7 }
  0x3f   : > { %433 = shalt.err (!%p430_p8)
}
  0x40   : > { %s434_s24 = scalar_lea.vmem %s672_s4, 128  ;;  %s538_s27 = smov [#allocation2]  }
  0x41   : > { %p435_p9 = scmp.ne.s32.totalorder %s672_s4, %s434_s24  ;;  %s439_s29 = sshll.u32 %s538_s27, 4  ;;  %s440_s29 = int_to_ptr.vmem [resolvable:$false] %s439_s29 }
  0x42   : > { %s441_s30 = scalar_lea.vmem %s440_s29, 256  ;;  %p442_p5 = scmp.lt.s32.totalorder %s672_s4, %s440_s29 }
  0x43   : > { %p437_p12 = pnand %p435_p9, %p421_p3  ;;  %p443_p10 = scmp.lt.s32.totalorder %s441_s30, %s434_s24 }
  0x45   : > { %p438_p0 = pneg %p437_p12  ;;  %p444_p4 = por %p443_p10, %p442_p5 }
  0x47   : > { %p445_p1 = pnand %p444_p4, %p438_p0 }
  0x49   : > { %448 = shalt.err (!%p445_p1)
}
  0x4a   : > { %333 = dma.hbm_to_vmem [thread:$0]  (!%p674_p11), %s670_s3, 128, %s672_s4, %s138_s26  }
  0x4b   : > { %p789_p7 = scmp.ne.s32.totalorder %s782_s21, 0 }
  0x4c   : > { %s706_s18 = sand.u32 (!%p789_p7), 1, %s519_s10   ;;  %p790_p3 = scmp.ne.s32.totalorder (!%p789_p7), %s780_s19, 0 }
  0x4d   : > { %158 = sbr.rel (%p789_p7) target bundleno = 113 (0x71), region = 28  ;;  %s311_s6 = sshll.u32 (!%p789_p7), %s706_s18, 3 }
  0x4e   : > { %s161_s7 = scalar_lea.sflag (!%p789_p7), [#allocation3], %s706_s18  ;;  %s164_s8 = scalar_lea.vmem (!%p789_p7), [#allocation2], %s311_s6 }
  0x54   : > { %502 = dma.done.wait (%p790_p3), %s161_s7, 128  }
  0x55   : > { %504 = vsyncadd (%p790_p3), %s161_s7, 4294967168  ;;  %p791_p2 = scmp.ne.s32.totalorder %s778_s17, 0 }
  0x57   : > { %506 = dma.done.wait (%p791_p2), [#allocation6], 128  }
  0x58   : > { %508 = vsyncadd (%p791_p2), [#allocation6], 4294967168  ;;  %s188_s21 = scalar_lea.vmem [#allocation7], %s311_s6  ;;  %s315_s4 = sshll.u32 %s527_s12, 7  ;;  %v191_v0 = vld [vmem:[#allocation5] sm:$0xff]  ;;  %v192_v1 = vld [vmem:[%s164_s8] sm:$0xff] }
  0x59   : > { %s211_s3 = sshll.u32 %s188_s21, 4  ;;  %vm194_vm0 = vcmask 261120   ;;  %v193_v2 = vadd.f32 %v192_v1, %v191_v0  ;;  %s724_s17 = scalar_lea.hbm %s773_s2, %s315_s4  ;;  %s719_s3 = int_to_ptr.vmem [resolvable:$true] %s211_s3 }
  0x5a   : > { %s197_s26 = scalar_lea.sflag [#allocation4], %s706_s18  ;;  %s449_s15 = scalar_lea.vmem %s719_s3, 128 }
  0x5b   : > { %195 = vst.msk [vmem:[%s188_s21] sm:$0xff] %vm194_vm0, %v193_v2  ;;  %p450_p11 = scmp.ne.s32.totalorder %s719_s3, %s449_s15  ;;  %s539_s12 = smov [#allocation7]  }
  0x5c   : > { %s453_s16 = sshll.u32 %s539_s12, 4  ;;  %s454_s16 = int_to_ptr.vmem [resolvable:$false] %s453_s16 }
  0x5d   : > { %p451_p6 = pnand %p450_p11, %p656_p13  ;;  %s455_s23 = scalar_lea.vmem %s454_s16, 256 }
  0x5e   : > { %p456_p9 = scmp.lt.s32.totalorder %s719_s3, %s454_s16  ;;  %p457_p12 = scmp.lt.s32.totalorder %s455_s23, %s449_s15 }
  0x5f   : > { %p452_p8 = pneg %p451_p6 }
  0x60   : > { %p458_p0 = por %p457_p12, %p456_p9 }
  0x62   : > { %p459_p5 = pnand %p458_p0, %p452_p8 }
  0x64   : > { %462 = shalt.err (!%p459_p5)
}
  0x65   : > { %s463_s24 = scalar_lea.hbm %s724_s17, 128  ;;  %s467_s30 = scalar_lea.hbm %s773_s2, 256 }
  0x66   : > { %p464_p10 = scmp.ne.s32.totalorder %s724_s17, %s463_s24  ;;  %p468_p7 = scmp.lt.u32.totalorder %s724_s17, %s773_s2 }
  0x67   : > { %p469_p3 = scmp.lt.u32.totalorder %s467_s30, %s463_s24  ;;  %p471_p11 = scmp.lt.u32.totalorder %s463_s24, %s724_s17 }
  0x68   : > { %p465_p4 = pnand %p464_p10, %p656_p13 }
  0x69   : > { %p470_p2 = por %p469_p3, %p468_p7 }
  0x6a   : > { %p466_p1 = pneg %p465_p4 }
  0x6b   : > { %p472_p6 = por %p471_p11, %p470_p2 }
  0x6d   : > { %p473_p8 = pnand %p472_p6, %p466_p1 }
  0x6f   : > { %476 = shalt.err (!%p473_p8)
}
  0x70   : > { %324 = dma.vmem_to_hbm [thread:$0]  (%p656_p13), %s719_s3, 128, %s724_s17, %s197_s26  }
  0x71 PF: > { %s223_s7 = sand.u32 1, %s515_s9   ;;  %p792_p9 = scmp.ne.s32.totalorder %s781_s20, 0 }
  0x72   : > { %p793_p12 = scmp.ge.s32.totalorder %s535_s14, 2  ;;  %s224_s8 = scalar_lea.sflag [#allocation4], %s223_s7 }
  0x74   : > { %p335_p0 = pnand %p793_p12, %p792_p9 }
  0x76   : > { %510 = dma.done.wait (!%p335_p0), %s224_s8, 128  }
  0x77   : > { %512 = vsyncadd (!%p335_p0), %s224_s8, 4294967168  ;;  %s19_s14 = sadd.s32 1, %s535_s14   ;;  %s794_s9 = smov %s519_s10 }
  0x78   : > { %p16_p5 = scmp.ge.s32.totalorder %s19_s14, 4   ;;  %s795_s10 = smov %s523_s11 }
  0x79   : > { %s796_s11 = smov %s664_s28  ;;  %s797_s12 = smov %s531_s13 }
  0x7a   : > { %s798_s13 = smov %s800_s25  ;;  %18 = sbr.rel (!%p16_p5) target bundleno = 7 (0x7), region = 78 }
  0x81   :  { %229 = vsyncpa [#allocation3], 1 }
  0x82   :  { %231 = vsyncpa [#allocation3 + $0x1], 1 }
  0x83   :  { %232 = vsyncpa [#allocation6], 1 }
  0x84   :  { %233 = vsyncpa [#allocation4], 1 }
  0x85   :  { %235 = vsyncpa [#allocation4 + $0x1], 1 }

</bundles_post_ra>
